<compile_context>
chip_gen: v7x
topology: tpu7x:2x2x1
jax: 0.10.0
libtpu: 0.0.40
codegen_flags: <defaults>
</compile_context>

<pallas_src>
import functools

import jax
import jax.numpy as jnp
from jax.experimental import pallas as pl
from jax.experimental.pallas import tpu as pltpu


def _pos_enc_kernel(x_ref, pe_ref, o_ref):
    # (TILE_ROWS, COLS) tiles — add at f32 precision, cast only on the store.
    o_ref[...] = (x_ref[...].astype(jnp.float32)
                  + pe_ref[...].astype(jnp.float32)).astype(o_ref.dtype)


def make_positional_encoding(d_model: int, max_len: int) -> jnp.ndarray:
    """Deterministic buffer identical to the PyTorch __init__ (shape (1, max_len, d_model), f32)."""
    position = jnp.arange(max_len, dtype=jnp.float32)[:, None]                 # (max_len, 1)
    div_term = jnp.exp(jnp.arange(0, d_model, 2, dtype=jnp.float32)
                       * (-jnp.log(10000.0) / d_model))                        # (d_model//2,)
    pe = jnp.zeros((max_len, d_model), dtype=jnp.float32)
    pe = pe.at[:, 0::2].set(jnp.sin(position * div_term))
    pe = pe.at[:, 1::2].set(jnp.cos(position * div_term))
    return pe[None, :, :]                                                      # (1, max_len, d_model)


@functools.lru_cache(maxsize=1)
def _vmem_config():
    """(working-set budget, explicit scoped-VMEM limit), sized off the actual chip."""
    try:
        cap = int(pltpu.get_tpu_info().vmem_capacity_bytes)
    except Exception:
        cap = 64 << 20  # most conservative physical VMEM (v7x per-TC)
    # ~1/3 of physical VMEM for the double-buffered tiles, ~1/2 as the explicit limit
    # (headroom for Mosaic internal scratch).  128 MiB parts: 42/64 MiB; v7x: 21/32 MiB.
    return cap // 3, cap // 2


def _lane_dense_view(S: int, D: int, max_len: int):
    """Pick a collapsed (rows, cols) view of the (S, D) slab with a lane-dense last dim.

    cols must divide both S*D (x view) and max_len*D (full-pe view) so the pe prefix
    pe[:S] corresponds exactly to the first S*D//cols rows of the collapsed pe buffer.
    """
    if D % 128 == 0:
        return S, D, max_len
    n, m = S * D, max_len * D
    if n % 128 == 0 and m % 128 == 0:
        for cols in (2048, 1024, 512, 256, 128):
            if n % cols == 0 and m % cols == 0:
                return n // cols, cols, m // cols
    # Fallback: natural (S, D) layout.  D < 128 ⇒ masked vst.msk stores; acceptable for a
    # DMA-bound add — do NOT pad, padding would add real HBM traffic.
    return S, D, max_len


def _choose_tile_rows(rows: int, cols: int, x_itemsize: int, vmem_budget_bytes: int) -> int:
    """Largest dtype-aligned row tile fitting the budget, while keeping >=2 (prefer >=4) tiles."""
    sub = 8 * max(1, 4 // x_itemsize)                    # 8 f32, 16 bf16/f16, 32 int8/fp8
    # Per-row VMEM cost: x + out tiles (x.dtype, double-buffered) + pe tile (f32, double-buffered).
    bytes_per_row = cols * (4 * x_itemsize + 2 * 4)
    budget_rows = max(vmem_budget_bytes // bytes_per_row, sub)
    # Keep >= 2 (prefer >= 4) row tiles: overlaps writeback of step i with fetch of i+1 and
    # lets v7x megacore shard the row axis even when B == 1.
    min_tiles = 4 if rows >= 4 * sub else 2
    cap_rows = max(sub, (pl.cdiv(rows, min_tiles) // sub) * sub)
    tile = min(budget_rows, cap_rows, rows)
    return max(sub, (tile // sub) * sub)


def _positional_encoding_forward_impl(x: jnp.ndarray, pe: jnp.ndarray) -> jnp.ndarray:
    """x: (B, S, D);  pe: (1, max_len, D) or (max_len, D) f32 buffer;  returns x + pe[:, :S]."""
    B, S, D = x.shape
    pe2d = pe.reshape(pe.shape[-2], pe.shape[-1])        # (max_len, D), stays f32
    max_len = pe2d.shape[0]

    rows, cols, pe_rows = _lane_dense_view(S, D, max_len)
    x_itemsize = jnp.dtype(x.dtype).itemsize
    sub = 8 * max(1, 4 // x_itemsize)

    x2 = x.reshape(B, rows, cols)                        # bitcast under jit (contiguous)
    pe_flat = pe2d.reshape(pe_rows, cols)                # bitcast under jit (contiguous)

    vmem_budget, vmem_limit = _vmem_config()

    if rows <= sub:
        # Tiny slab: single full-extent block per batch.  A static prefix view of pe keeps
        # block dims == full array dims (trivially satisfies the (8,128) rule); cost is
        # negligible at this size.
        tile_rows = rows
        pe_in = pe_flat[:rows]
    else:
        # pe[:S] is selected implicitly: collapsed-pe row block s == collapsed-x row block s
        # (same contiguous prefix).  No wrapper-side slice/cast materialization.
        tile_rows = _choose_tile_rows(rows, cols, x_itemsize, vmem_budget)
        pe_in = pe_flat

    # Grid: (row_tiles, B) with B innermost -> pe block index constant across consecutive
    # steps, so each pe tile is fetched once per row tile, not once per (b, tile).
    grid = (pl.cdiv(rows, tile_rows), B)

    out2 = pl.pallas_call(
        _pos_enc_kernel,
        out_shape=jax.ShapeDtypeStruct((B, rows, cols), x.dtype),
        grid_spec=pltpu.PrefetchScalarGridSpec(
            num_scalar_prefetch=0,
            grid=grid,
            in_specs=[
                pl.BlockSpec((pl.Squeezed(), tile_rows, cols), lambda s, b: (b, s, 0)),
                pl.BlockSpec((tile_rows, cols), lambda s, b: (s, 0)),
            ],
            out_specs=pl.BlockSpec((pl.Squeezed(), tile_rows, cols), lambda s, b: (b, s, 0)),
        ),
        compiler_params=pltpu.CompilerParams(
            dimension_semantics=("parallel", "parallel"),
            vmem_limit_bytes=vmem_limit,
        ),
    )(x2, pe_in)

    return out2.reshape(B, S, D)


# jit so the reshapes / prefix view are layout bitcasts fused around the pallas_call.
positional_encoding_forward = jax.jit(_positional_encoding_forward_impl)


if __name__ == "__main__":
    key = jax.random.PRNGKey(0)

    # Primary check: shapes implied by the module (d_model=32 -> lane-dense collapse to 256 cols).
    d_model, max_len = 32, 16
    batch, seq = 2, 8
    pe = make_positional_encoding(d_model, max_len)
    x = jax.random.normal(key, (batch, seq, d_model), dtype=jnp.float32)

    out = positional_encoding_forward(x, pe)
    jax.block_until_ready(out)
    ref = x + pe[:, :seq]
    assert out.shape == (batch, seq, d_model)
    assert jnp.allclose(out, ref, atol=1e-6), "mismatch vs reference (D=32 path)"

    # Secondary check: D already a multiple of 128 (native lane-dense, implicit pe slicing,
    # multi-tile row grid).
    d_model2, max_len2, seq2 = 128, 32, 16
    pe2 = make_positional_encoding(d_model2, max_len2)
    x2 = jax.random.normal(jax.random.PRNGKey(0), (batch, seq2, d_model2), dtype=jnp.float32)
    out2 = positional_encoding_forward(x2, pe2)
    jax.block_until_ready(out2)
    ref2 = x2 + pe2[:, :seq2]
    assert jnp.allclose(out2, ref2, atol=1e-6), "mismatch vs reference (D=128 path)"

    print("KERNEL_OK")
</pallas_src>

<mosaic_0001>
module attributes {stable_mosaic.version = 11 : i64} {
  func.func @_pos_enc_kernel(%arg0: i32, %arg1: i32, %arg2: memref<1x1x256xf32, #tpu.memory_space<vmem>>, %arg3: memref<1x256xf32, #tpu.memory_space<vmem>>, %arg4: memref<1x1x256xf32, #tpu.memory_space<vmem>>) attributes {dimension_semantics = [#tpu.dimension_semantics<parallel>, #tpu.dimension_semantics<parallel>], iteration_bounds = array<i64: 1, 2>, scalar_prefetch = 0 : i64, scratch_operands = 0 : i64, tpu.core_type = #tpu.core_type<tc>, window_params = [{transform_indices = @transform_0, window_bounds = array<i64: 1, 1, 256>}, {transform_indices = @transform_1, window_bounds = array<i64: 1, 256>}, {transform_indices = @transform_2, window_bounds = array<i64: 1, 1, 256>}]} {
    %c0 = arith.constant 0 : index
    %c0_0 = arith.constant 0 : index
    %c0_1 = arith.constant 0 : index
    %0 = vector.load %arg2[%c0, %c0_0, %c0_1] : memref<1x1x256xf32, #tpu.memory_space<vmem>>, vector<1x1x256xf32>
    %1 = vector.shape_cast %0 : vector<1x1x256xf32> to vector<1x256xf32>
    %c0_2 = arith.constant 0 : index
    %c0_3 = arith.constant 0 : index
    %2 = vector.load %arg3[%c0_2, %c0_3] : memref<1x256xf32, #tpu.memory_space<vmem>>, vector<1x256xf32>
    %3 = arith.addf %1, %2 : vector<1x256xf32>
    %c0_4 = arith.constant 0 : index
    %c0_5 = arith.constant 0 : index
    %c0_6 = arith.constant 0 : index
    %4 = vector.load %arg4[%c0_4, %c0_5, %c0_6] : memref<1x1x256xf32, #tpu.memory_space<vmem>>, vector<1x1x256xf32>
    %5 = vector.shape_cast %4 : vector<1x1x256xf32> to vector<1x256xf32>
    %6 = vector.shape_cast %3 : vector<1x256xf32> to vector<1x1x256xf32>
    tpu.vector_store %arg4[%c0_4, %c0_5, %c0_6], %6 {strides = array<i32>} : memref<1x1x256xf32, #tpu.memory_space<vmem>>, vector<1x1x256xf32>,
    return
  }
  func.func @transform_0(%arg0: i32, %arg1: i32) -> (i32, i32, i32) {
    %c0_i32 = arith.constant 0 : i32
    %c0_i32_0 = arith.constant 0 : i32
    return %arg1, %arg0, %c0_i32 : i32, i32, i32
  }
  func.func @transform_1(%arg0: i32, %arg1: i32) -> (i32, i32) {
    %c0_i32 = arith.constant 0 : i32
    %c0_i32_0 = arith.constant 0 : i32
    return %arg0, %c0_i32 : i32, i32
  }
  func.func @transform_2(%arg0: i32, %arg1: i32) -> (i32, i32, i32) {
    %c0_i32 = arith.constant 0 : i32
    %c0_i32_0 = arith.constant 0 : i32
    return %arg1, %arg0, %c0_i32 : i32, i32, i32
  }
}

</mosaic_0001>

<bundles_post_ra>
// kernel: _positional_encoding_forward_impl.1
= control target key start
LH: loop header
LB: loop body
LE: loop exit
PB: predicated region body
PF: predicated region fallthrough
CT: control target
= control target key end

     0   :  { %s372_s9 = smov 0   ;;  %s374_s10 = smov 0   ;;  %s396_s0 = inlined_call_operand.vmem [shape: f32[2,1,256], index: 0, kind: input, shape index: {}]   ;;  %s397_s1 = inlined_call_operand.vmem [shape: f32[1,256], index: 1, kind: input, shape index: {}]   ;;  %s398_s2 = inlined_call_operand.vmem [shape: f32[2,1,256], index: 2, kind: output, shape index: {}]  }
   0x1   :  { %s376_s11 = smov 0  }
   0x2 LB: > { %s21_s12 = sadd.s32 1, %s351_s10  ;;  %p304_p0 = scmp.ge.s32.totalorder %s355_s11, 1  ;;  %s355_s11 = sphi %s376_s11, %s12_s11   ;;  %s351_s10 = sphi %s374_s10, %s400_s10   ;;  %s347_s9 = sphi %s372_s9, %s399_s9  }
   0x3   : > { %p22_p1 = scmp.ge.s32.totalorder %s21_s12, 2  ;;  %p140_p2 = scmp.lt.s32.totalorder %s355_s11, 3 }
   0x5   : > { %s402_s12 = smov (%p22_p1, %s21_s12), 0  ;;  %p141_p3 = pnand %p304_p0, %p140_p2 }
   0x6   : > { %p172_p4 = scmp.lt.s32.totalorder (!%p141_p3), %s347_s9, 1  ;;  %v195_v0 = vlaneseq (!%p141_p3)  ;;  %v193_v1 = vld [vmem:[%s397_s1] sm:$0x3] (!%p141_p3) }
   0x7   : > { %144 = sbr.rel (%p141_p3) target bundleno = 21 (0x15), region = 28 }
   0x8   : > { %vm197_vm0 = vcmp.lt.s32.totalorder (!%p141_p3), %v195_v0, 256 }
   0xe   : > { %s404_s9 = smov (!%p172_p4, %s347_s9), 1 }
   0xf   : > { %s305_s13 = sshll.u32 %s404_s9, 1 }
  0x10   : > { %s179_s18 = scalar_lea.vmem %s396_s0, %s305_s13  ;;  %s191_s21 = scalar_lea.vmem %s398_s2, %s305_s13 }
  0x11   : > { %v192_v2 = vld [vmem:[%s179_s18] sm:$0x3] }
  0x12   : > { %v194_v3 = vadd.f32 %v193_v1, %v192_v2 }
  0x14   : > { %199 = vst.msk [vmem:[%s191_s21] sm:$0x3] %vm197_vm0, %v194_v3 }
  0x15 PF: > { %s12_s11 = sadd.s32 1, %s355_s11   ;;  %s399_s9 = smov %s351_s10 }
  0x16   : > { %p9_p5 = scmp.ge.s32.totalorder %s12_s11, 4   ;;  %s400_s10 = smov %s402_s12 }
  0x18   :  { %11 = sbr.rel (!%p9_p5) target bundleno = 2 (0x2), region = 61 }

</bundles_post_ra>
